<compile_context>
chip_gen: v6e
topology: v6e:2x2x1
jax: 0.10.0
libtpu: 0.0.40
codegen_flags: <defaults>
</compile_context>

<pallas_src>
import jax
import jax.numpy as jnp
from jax.experimental import pallas as pl
from jax.experimental.pallas import tpu as pltpu

_LANE = 512                         # lane-dense row width (multiple of 128)
_SUB = 8                            # sublane quantum
_DEF_MAX_TILE_BYTES = 2 * 1024 * 1024   # per-tensor per-step tile cap
_FAST_PATH_BYTES = 2 * 1024 * 1024      # below this total size, plain jnp wins
_VMEM_LIMIT_BYTES = 32 * 1024 * 1024    # safe scoped-VMEM ceiling on all gens


def _zero_loss_kernel(a_ref, b_ref, c_ref, d_ref, out_ref, acc_ref):
    """Accumulate sum(|a|+|b|+|c|+|d|) of one row-tile into an (8, LANE) acc.

    grid = (steps,): 1-D reduction over row tiles ("arbitrary").
    """
    step = pl.program_id(0)

    @pl.when(step == 0)
    def _init():
        acc_ref[...] = jnp.zeros_like(acc_ref)

    def fold(ref):
        # Cast to f32 in-kernel (inputs stay in native dtype through the DMA),
        # then fold sublane groups: (r, LANE) -> (r//8, 8, LANE) -> sum groups.
        # The reshape does not cross (8,128) tiles, and the axis-0 sum is plain
        # VPU vreg adds (no XLU).
        x = jnp.abs(ref[...].astype(jnp.float32))
        r = x.shape[0]
        if r == _SUB:
            return x
        return x.reshape(r // _SUB, _SUB, _LANE).sum(axis=0)

    acc_ref[...] += fold(a_ref) + fold(b_ref) + fold(c_ref) + fold(d_ref)

    @pl.when(step == pl.num_programs(0) - 1)
    def _finalize():
        # One small cross-lane reduction, amortized over all grid steps.
        s = jnp.sum(acc_ref[...])
        out_ref[...] = jnp.full(out_ref.shape, s, dtype=jnp.float32)


def _as_row_slab(x, padded_rows):
    """Flatten x into a (padded_rows, _LANE) lane-dense slab (zero padded).

    For contiguous arrays whose size is already padded_rows*_LANE this is a
    free metadata reshape; otherwise a small zero pad is appended (exact for
    |x| sums). TODO(synk): use a masked final tile to avoid the pad copy.
    """
    flat = x.reshape(-1)
    n = flat.shape[0]
    total = padded_rows * _LANE
    if total != n:
        flat = jnp.concatenate([flat, jnp.zeros((total - n,), dtype=flat.dtype)])
    return flat.reshape(padded_rows, _LANE)


def zero_loss(fea_A_separate_B, fea_B_separate_A,
              fea_FA_separate_B, fea_FB_separate_A, lr=0.01,
              *, min_kernel_bytes=_FAST_PATH_BYTES,
              max_tile_bytes=_DEF_MAX_TILE_BYTES):
    """Scalar loss, identical to ZeroLoss.forward."""
    tensors = (fea_A_separate_B, fea_B_separate_A,
               fea_FA_separate_B, fea_FB_separate_A)
    n = tensors[0].size
    # Fused normalization (sum_all / n) is only valid for equal element counts,
    # which is how DDFSeg uses this loss.
    # TODO(synk): fall back to per-tensor normalization if sizes ever differ.
    assert all(t.size == n for t in tensors), "feature maps must have equal size"

    itemsizes = [jnp.dtype(t.dtype).itemsize for t in tensors]
    total_bytes = sum(n * s for s in itemsizes)

    # Tiny inputs: pallas_call launch + per-step overhead dominates; plain jnp.
    if total_bytes < min_kernel_bytes:
        return lr * sum(jnp.mean(jnp.abs(t).astype(jnp.float32)) for t in tensors)

    # --- tiling (rows of 512 lanes, row count rounded to the sublane quantum) --
    rows = pl.cdiv(n, _LANE)
    rows8 = pl.cdiv(rows, _SUB) * _SUB
    max_itemsize = max(itemsizes)
    cap_rows = max(_SUB, (max_tile_bytes // (_LANE * max_itemsize)) // _SUB * _SUB)
    tile_rows = min(cap_rows, rows8)
    steps = pl.cdiv(rows8, tile_rows)
    padded_rows = steps * tile_rows

    slabs = [_as_row_slab(t, padded_rows) for t in tensors]

    in_spec = pl.BlockSpec((tile_rows, _LANE), lambda i: (i, 0))
    out = pl.pallas_call(
        _zero_loss_kernel,
        out_shape=jax.ShapeDtypeStruct((_SUB, 128), jnp.float32),
        grid_spec=pltpu.PrefetchScalarGridSpec(
            num_scalar_prefetch=0,
            grid=(steps,),
            in_specs=[in_spec, in_spec, in_spec, in_spec],
            out_specs=pl.BlockSpec((_SUB, 128), lambda i: (0, 0)),
            scratch_shapes=[pltpu.VMEM((_SUB, _LANE), jnp.float32)],
        ),
        compiler_params=pltpu.CompilerParams(
            dimension_semantics=("arbitrary",),
            vmem_limit_bytes=_VMEM_LIMIT_BYTES,
        ),
    )(*slabs)

    # out[0, 0] holds sum(|a|)+sum(|b|)+sum(|c|)+sum(|d|); equal-size tensors
    # make the fused normalization exact: lr*(sum/n per tensor) == lr*total/n.
    return out[0, 0] * (lr / n)


if __name__ == "__main__":
    key = jax.random.PRNGKey(0)
    k1, k2, k3, k4 = jax.random.split(key, 4)

    # Feature maps, NCHW.
    shape = (2, 4, 16, 16)
    fea_a = jax.random.normal(k1, shape, dtype=jnp.float32)
    fea_b = jax.random.normal(k2, shape, dtype=jnp.float32)
    fea_fa = jax.random.normal(k3, shape, dtype=jnp.float32)
    fea_fb = jax.random.normal(k4, shape, dtype=jnp.float32)

    lr = 0.01
    ref = lr * (jnp.mean(jnp.abs(fea_a)) + jnp.mean(jnp.abs(fea_b))
                + jnp.mean(jnp.abs(fea_fa)) + jnp.mean(jnp.abs(fea_fb)))

    # 1) Force the Pallas kernel path on the small demo shape.
    loss = jax.block_until_ready(
        zero_loss(fea_a, fea_b, fea_fa, fea_fb, lr=lr, min_kernel_bytes=0))
    assert jnp.allclose(loss, ref, rtol=1e-5, atol=1e-6), (loss, ref)

    # 2) Default dispatch: tiny inputs take the jnp fast path.
    loss_fast = jax.block_until_ready(zero_loss(fea_a, fea_b, fea_fa, fea_fb, lr=lr))
    assert jnp.allclose(loss_fast, ref, rtol=1e-5, atol=1e-6), (loss_fast, ref)

    # 3) Multi-step reduction grid + mixed dtype (bf16 streamed natively):
    #    tiny per-step tiles force several grid iterations through the
    #    accumulate path.
    shape2 = (2, 8, 32, 32)
    g1, g2, g3, g4 = jax.random.split(jax.random.PRNGKey(1), 4)
    xa = jax.random.normal(g1, shape2, dtype=jnp.float32)
    xb = jax.random.normal(g2, shape2, dtype=jnp.bfloat16)
    xc = jax.random.normal(g3, shape2, dtype=jnp.float32)
    xd = jax.random.normal(g4, shape2, dtype=jnp.float32)
    ref2 = lr * (jnp.mean(jnp.abs(xa))
                 + jnp.mean(jnp.abs(xb).astype(jnp.float32))
                 + jnp.mean(jnp.abs(xc)) + jnp.mean(jnp.abs(xd)))
    loss2 = jax.block_until_ready(
        zero_loss(xa, xb, xc, xd, lr=lr, min_kernel_bytes=0,
                  max_tile_bytes=_SUB * _LANE * 4))
    assert jnp.allclose(loss2, ref2, rtol=1e-4, atol=1e-6), (loss2, ref2)

    print("KERNEL_OK")
</pallas_src>

<mosaic_0001>
module attributes {stable_mosaic.version = 11 : i64} {
  func.func @_zero_loss_kernel(%arg0: i32, %arg1: memref<8x512xf32, #tpu.memory_space<vmem>>, %arg2: memref<8x512xf32, #tpu.memory_space<vmem>>, %arg3: memref<8x512xf32, #tpu.memory_space<vmem>>, %arg4: memref<8x512xf32, #tpu.memory_space<vmem>>, %arg5: memref<8x128xf32, #tpu.memory_space<vmem>>, %arg6: memref<8x512xf32, #tpu.memory_space<vmem>>) attributes {dimension_semantics = [#tpu.dimension_semantics<arbitrary>], iteration_bounds = array<i64: 1>, scalar_prefetch = 0 : i64, scratch_operands = 1 : i64, tpu.core_type = #tpu.core_type<tc>, window_params = [{transform_indices = @transform_0, window_bounds = array<i64: 8, 512>}, {transform_indices = @transform_1, window_bounds = array<i64: 8, 512>}, {transform_indices = @transform_2, window_bounds = array<i64: 8, 512>}, {transform_indices = @transform_3, window_bounds = array<i64: 8, 512>}, {pipeline_mode = #tpu.pipeline_mode<synchronous>, transform_indices = @transform_4, window_bounds = array<i64: 8, 128>}]} {
    %c0_i32 = arith.constant 0 : i32
    %0 = arith.cmpi eq, %arg0, %c0_i32 : i32
    %1 = arith.extui %0 : i1 to i32
    %c0_i32_0 = arith.constant 0 : i32
    %2 = arith.cmpi ne, %1, %c0_i32_0 : i32
    scf.if %2 {
      %cst = arith.constant 0.000000e+00 : f32
      %20 = vector.broadcast %cst : f32 to vector<8x512xf32>
      %c0_14 = arith.constant 0 : index
      %c0_15 = arith.constant 0 : index
      %21 = vector.load %arg6[%c0_14, %c0_15] : memref<8x512xf32, #tpu.memory_space<vmem>>, vector<8x512xf32>
      tpu.vector_store %arg6[%c0_14, %c0_15], %20 {strides = array<i32>} : memref<8x512xf32, #tpu.memory_space<vmem>>, vector<8x512xf32>,
    } else {
    }
    %c0 = arith.constant 0 : index
    %c0_1 = arith.constant 0 : index
    %3 = vector.load %arg6[%c0, %c0_1] : memref<8x512xf32, #tpu.memory_space<vmem>>, vector<8x512xf32>
    %c0_2 = arith.constant 0 : index
    %c0_3 = arith.constant 0 : index
    %4 = vector.load %arg1[%c0_2, %c0_3] : memref<8x512xf32, #tpu.memory_space<vmem>>, vector<8x512xf32>
    %5 = math.absf %4 : vector<8x512xf32>
    %c0_4 = arith.constant 0 : index
    %c0_5 = arith.constant 0 : index
    %6 = vector.load %arg2[%c0_4, %c0_5] : memref<8x512xf32, #tpu.memory_space<vmem>>, vector<8x512xf32>
    %7 = math.absf %6 : vector<8x512xf32>
    %8 = arith.addf %5, %7 : vector<8x512xf32>
    %c0_6 = arith.constant 0 : index
    %c0_7 = arith.constant 0 : index
    %9 = vector.load %arg3[%c0_6, %c0_7] : memref<8x512xf32, #tpu.memory_space<vmem>>, vector<8x512xf32>
    %10 = math.absf %9 : vector<8x512xf32>
    %11 = arith.addf %8, %10 : vector<8x512xf32>
    %c0_8 = arith.constant 0 : index
    %c0_9 = arith.constant 0 : index
    %12 = vector.load %arg4[%c0_8, %c0_9] : memref<8x512xf32, #tpu.memory_space<vmem>>, vector<8x512xf32>
    %13 = math.absf %12 : vector<8x512xf32>
    %14 = arith.addf %11, %13 : vector<8x512xf32>
    %15 = arith.addf %3, %14 : vector<8x512xf32>
    %c0_10 = arith.constant 0 : index
    %c0_11 = arith.constant 0 : index
    %16 = vector.load %arg6[%c0_10, %c0_11] : memref<8x512xf32, #tpu.memory_space<vmem>>, vector<8x512xf32>
    tpu.vector_store %arg6[%c0_10, %c0_11], %15 {strides = array<i32>} : memref<8x512xf32, #tpu.memory_space<vmem>>, vector<8x512xf32>,
    %c0_i32_12 = arith.constant 0 : i32
    %17 = arith.cmpi eq, %arg0, %c0_i32_12 : i32
    %18 = arith.extui %17 : i1 to i32
    %c0_i32_13 = arith.constant 0 : i32
    %19 = arith.cmpi ne, %18, %c0_i32_13 : i32
    scf.if %19 {
      %c0_14 = arith.constant 0 : index
      %c0_15 = arith.constant 0 : index
      %20 = vector.load %arg6[%c0_14, %c0_15] : memref<8x512xf32, #tpu.memory_space<vmem>>, vector<8x512xf32>
      %21 = vector.shape_cast %20 : vector<8x512xf32> to vector<1x8x512xf32>
      %cst = arith.constant dense<0.000000e+00> : vector<1xf32>
      %22 = vector.multi_reduction <add>, %21, %cst [1, 2] : vector<1x8x512xf32> to vector<1xf32>
      %23 = vector.shape_cast %22 : vector<1xf32> to vector<1x1x1xf32>
      %24 = vector.extract %23[0, 0, 0] : f32 from vector<1x1x1xf32>
      %25 = vector.broadcast %24 : f32 to vector<8x128xf32>
      %c0_16 = arith.constant 0 : index
      %c0_17 = arith.constant 0 : index
      %26 = vector.load %arg5[%c0_16, %c0_17] : memref<8x128xf32, #tpu.memory_space<vmem>>, vector<8x128xf32>
      tpu.vector_store %arg5[%c0_16, %c0_17], %25 {strides = array<i32>} : memref<8x128xf32, #tpu.memory_space<vmem>>, vector<8x128xf32>,
    } else {
    }
    return
  }
  func.func @transform_0(%arg0: i32) -> (i32, i32) {
    %c0_i32 = arith.constant 0 : i32
    %c0_i32_0 = arith.constant 0 : i32
    return %arg0, %c0_i32 : i32, i32
  }
  func.func @transform_1(%arg0: i32) -> (i32, i32) {
    %c0_i32 = arith.constant 0 : i32
    %c0_i32_0 = arith.constant 0 : i32
    return %arg0, %c0_i32 : i32, i32
  }
  func.func @transform_2(%arg0: i32) -> (i32, i32) {
    %c0_i32 = arith.constant 0 : i32
    %c0_i32_0 = arith.constant 0 : i32
    return %arg0, %c0_i32 : i32, i32
  }
  func.func @transform_3(%arg0: i32) -> (i32, i32) {
    %c0_i32 = arith.constant 0 : i32
    %c0_i32_0 = arith.constant 0 : i32
    return %arg0, %c0_i32 : i32, i32
  }
  func.func @transform_4(%arg0: i32) -> (i32, i32) {
    %c0_i32 = arith.constant 0 : i32
    %c0_i32_0 = arith.constant 0 : i32
    %c0_i32_1 = arith.constant 0 : i32
    return %c0_i32, %c0_i32_0 : i32, i32
  }
}

</mosaic_0001>

<bundles_post_ra>
// kernel: tpu_custom_call.1
= control target key start
LH: loop header
LB: loop body
LE: loop exit
PB: predicated region body
PF: predicated region fallthrough
CT: control target
= control target key end

     0   :  { %9 = vsyncpa [#allocation4], 0  ;;  %s327_s0 = inlined_call_operand.hbm [shape: f32[8,512], index: 0, kind: input, shape index: {}]   ;;  %s328_s1 = inlined_call_operand.hbm [shape: f32[8,512], index: 1, kind: input, shape index: {}]   ;;  %s329_s2 = inlined_call_operand.hbm [shape: f32[8,512], index: 2, kind: input, shape index: {}]   ;;  %s330_s3 = inlined_call_operand.hbm [shape: f32[8,512], index: 3, kind: input, shape index: {}]   ;;  %s331_s4 = inlined_call_operand.hbm [shape: f32[8,128], index: 4, kind: output, shape index: {}]  }
   0x1   :  { %10 = vsyncpa [#allocation7], 0 }
   0x2   :  { %11 = vsyncpa [#allocation10], 0 }
   0x3   :  { %12 = vsyncpa [#allocation5], 0  ;;  %s282_s15 = smov [#allocation6]   ;;  %s283_s17 = smov [#allocation3]  }
   0x4   :  { %s29_s16 = sshll.u32 %s282_s15, 4  ;;  %s19_s18 = sshll.u32 %s283_s17, 4  ;;  %s30_s16 = int_to_ptr.vmem [resolvable:$true] %s29_s16  ;;  %s20_s18 = int_to_ptr.vmem [resolvable:$true] %s19_s18 }
   0x5   :  { %s182_s19 = scalar_lea.vmem %s30_s16, 512  ;;  %p187_p1 = scmp.lt.s32.totalorder %s30_s16, %s30_s16 }
   0x6   :  { %p183_p0 = scmp.ne.s32.totalorder %s30_s16, %s182_s19  ;;  %p188_p2 = scmp.lt.s32.totalorder %s182_s19, %s182_s19 }
   0x8   :  { %p189_p3 = por %p188_p2, %p187_p1 }
   0xa   :  { %p190_p4 = pnand %p189_p3, %p183_p0 }
   0xc   :  { %193 = shalt.err (!%p190_p4)
}
   0xd   :  { %32 = dma.hbm_to_vmem [thread:$0]  %s328_s1, 512, %s30_s16, [#allocation7]  }
   0xe   :  { %s202_s22 = scalar_lea.vmem %s20_s18, 512  ;;  %p207_p6 = scmp.lt.s32.totalorder %s20_s18, %s20_s18 }
   0xf   :  { %p203_p5 = scmp.ne.s32.totalorder %s20_s18, %s202_s22  ;;  %p208_p7 = scmp.lt.s32.totalorder %s202_s22, %s202_s22 }
  0x11   :  { %p209_p8 = por %p208_p7, %p207_p6 }
  0x13   :  { %p210_p9 = pnand %p209_p8, %p203_p5 }
  0x15   :  { %213 = shalt.err (!%p210_p9)
}
  0x16   :  { %22 = dma.hbm_to_vmem [thread:$0]  %s327_s0, 512, %s20_s18, [#allocation4]  }
  0x17   :  { %s284_s25 = smov [#allocation8]   ;;  %s285_s27 = smov [#allocation9]  }
  0x18   :  { %s39_s26 = sshll.u32 %s284_s25, 4  ;;  %s49_s28 = sshll.u32 %s285_s27, 4  ;;  %s40_s26 = int_to_ptr.vmem [resolvable:$true] %s39_s26  ;;  %s50_s28 = int_to_ptr.vmem [resolvable:$true] %s49_s28 }
  0x19   :  { %s222_s29 = scalar_lea.vmem %s40_s26, 512  ;;  %p227_p11 = scmp.lt.s32.totalorder %s40_s26, %s40_s26 }
  0x1a   :  { %p223_p10 = scmp.ne.s32.totalorder %s40_s26, %s222_s29  ;;  %p228_p12 = scmp.lt.s32.totalorder %s222_s29, %s222_s29 }
  0x1c   :  { %p229_p13 = por %p228_p12, %p227_p11 }
  0x1e   :  { %p230_p0 = pnand %p229_p13, %p223_p10 }
  0x20   :  { %233 = shalt.err (!%p230_p0)
}
  0x21   :  { %42 = dma.hbm_to_vmem [thread:$0]  %s329_s2, 512, %s40_s26, [#allocation7]  }
  0x22   :  { %s242_s5 = scalar_lea.vmem %s50_s28, 512  ;;  %p247_p2 = scmp.lt.s32.totalorder %s50_s28, %s50_s28 }
  0x23   :  { %p243_p1 = scmp.ne.s32.totalorder %s50_s28, %s242_s5  ;;  %p248_p3 = scmp.lt.s32.totalorder %s242_s5, %s242_s5 }
  0x25   :  { %p249_p4 = por %p248_p3, %p247_p2 }
  0x27   :  { %p250_p5 = pnand %p249_p4, %p243_p1 }
  0x29   :  { %253 = shalt.err (!%p250_p5)
}
  0x2a   :  { %52 = dma.hbm_to_vmem [thread:$0]  %s330_s3, 512, %s50_s28, [#allocation10]  }
  0x2b   :  { %274 = dma.done.wait [#allocation4], 512  }
  0x2c   :  { %275 = vsyncadd [#allocation4], 4294966784 }
  0x2d   :  { %276 = dma.done.wait [#allocation7], 1024  }
  0x2e   :  { %277 = vsyncadd [#allocation7], 4294966272 }
  0x2f   :  { %278 = dma.done.wait [#allocation10], 512  }
  0x30   :  { %279 = vsyncadd [#allocation10], 4294966784  ;;  %v77_v0 = vld [vmem:[#allocation3] sm:$0xff]  ;;  %v78_v1 = vld [vmem:[#allocation3 + $0x8] sm:$0xff]  ;;  %s286_s2 = smov [#allocation11]  }
  0x31   :  { %v79_v2 = vld [vmem:[#allocation3 + $0x10] sm:$0xff]  ;;  %v80_v3 = vld [vmem:[#allocation3 + $0x18] sm:$0xff]  ;;  %v81_v4 = vand.u32 2147483647, %v77_v0  ;;  %v82_v5 = vand.u32 2147483647, %v78_v1 }
  0x32   :  { %v85_v6 = vld [vmem:[#allocation6] sm:$0xff]  ;;  %v83_v7 = vand.u32 2147483647, %v79_v2  ;;  %v84_v8 = vand.u32 2147483647, %v80_v3  ;;  %v86_v9 = vld [vmem:[#allocation6 + $0x8] sm:$0xff] }
  0x33   :  { %v87_v10 = vld [vmem:[#allocation6 + $0x10] sm:$0xff]  ;;  %v88_v11 = vld [vmem:[#allocation6 + $0x18] sm:$0xff]  ;;  %v89_v12 = vand.u32 2147483647, %v85_v6  ;;  %v90_v13 = vand.u32 2147483647, %v86_v9 }
  0x34   :  { %v97_v14 = vld [vmem:[#allocation8] sm:$0xff]  ;;  %v91_v15 = vand.u32 2147483647, %v87_v10  ;;  %v92_v16 = vand.u32 2147483647, %v88_v11  ;;  %v98_v17 = vld [vmem:[#allocation8 + $0x8] sm:$0xff] }
  0x35   :  { %v99_v18 = vld [vmem:[#allocation8 + $0x10] sm:$0xff]  ;;  %v93_v19 = vadd.f32 %v89_v12, %v81_v4  ;;  %v94_v20 = vadd.f32 %v90_v13, %v82_v5  ;;  %v100_v21 = vld [vmem:[#allocation8 + $0x18] sm:$0xff]  ;;  %v101_v22 = vand.u32 2147483647, %v97_v14  ;;  %v102_v23 = vand.u32 2147483647, %v98_v17 }
  0x36   :  { %v109_v24 = vld [vmem:[#allocation9] sm:$0xff]  ;;  %v95_v25 = vadd.f32 %v91_v15, %v83_v7  ;;  %v96_v26 = vadd.f32 %v92_v16, %v84_v8  ;;  %v103_v27 = vand.u32 2147483647, %v99_v18  ;;  %v104_v28 = vand.u32 2147483647, %v100_v21  ;;  %v110_v29 = vld [vmem:[#allocation9 + $0x8] sm:$0xff] }
  0x37   :  { %v111_v30 = vld [vmem:[#allocation9 + $0x10] sm:$0xff]  ;;  %v105_v31 = vadd.f32 %v101_v22, %v93_v19  ;;  %v106_v32 = vadd.f32 %v102_v23, %v94_v20  ;;  %v112_v33 = vld [vmem:[#allocation9 + $0x18] sm:$0xff]  ;;  %v113_v34 = vand.u32 2147483647, %v109_v24  ;;  %v114_v35 = vand.u32 2147483647, %v110_v29 }
  0x38   :  { %v107_v36 = vadd.f32 %v103_v27, %v95_v25  ;;  %v108_v37 = vadd.f32 %v104_v28, %v96_v26  ;;  %v115_v38 = vand.u32 2147483647, %v111_v30  ;;  %v116_v39 = vand.u32 2147483647, %v112_v33  ;;  %s156_s3 = sshll.u32 %s286_s2, 4  ;;  %s157_s3 = int_to_ptr.vmem [resolvable:$true] %s156_s3 }
  0x39   :  { %v117_v40 = vadd.f32 %v113_v34, %v105_v31  ;;  %v118_v41 = vadd.f32 %v114_v35, %v106_v32  ;;  %s254_s8 = scalar_lea.vmem %s157_s3, 128  ;;  %p259_p7 = scmp.lt.s32.totalorder %s157_s3, %s157_s3 }
  0x3a   :  { %v119_v42 = vadd.f32 %v115_v38, %v107_v36  ;;  %v120_v43 = vadd.f32 %v116_v39, %v108_v37  ;;  %p255_p6 = scmp.ne.s32.totalorder %s157_s3, %s254_s8  ;;  %p260_p8 = scmp.lt.s32.totalorder %s254_s8, %s254_s8 }
  0x3b   :  { %v136_v44 = vadd.f32 %v118_v41, %v117_v40 }
  0x3c   :  { %p261_p9 = por %p260_p8, %p259_p7 }
  0x3d   :  { %v137_v45 = vadd.f32 %v136_v44, %v119_v42 }
  0x3e   :  { %p262_p10 = pnand %p261_p9, %p255_p6 }
  0x3f   :  { %v138_v46 = vadd.f32 %v137_v45, %v120_v43 }
  0x41   :  { %139 = vadd.xlane.f32.xlu0 %v138_v46 }
  0xca   :  { %v140_v47 = vpop.xlane.xlu0 %139 }
  0xcb   :  { %v141_v48 = vrot.slane %v140_v47, 4 }
  0xcd   :  { %v142_v49 = vadd.f32 %v141_v48, %v140_v47 }
  0xcf   :  { %v143_v50 = vrot.slane %v142_v49, 2 }
  0xd1   :  { %v144_v51 = vadd.f32 %v143_v50, %v142_v49 }
  0xd3   :  { %v145_v52 = vrot.slane %v144_v51, 1 }
  0xd5   :  { %v146_v53 = vadd.f32 %v145_v52, %v144_v51 }
  0xd7   :  { %167 = vpush %v146_v53 }
 0x108   :  { %s168_s7 = spop %167 }
 0x109   :  { %v148_v54 = vstv %s168_s7 }
 0x10a   :  { %149 = vst [vmem:[#allocation11] sm:$0xff] %v148_v54 }
 0x10b   :  { %265 = shalt.err (!%p262_p10)
}
 0x10c   :  { %159 = dma.vmem_to_hbm [thread:$0]  %s157_s3, 128, %s331_s4, [#allocation5]  }
 0x10d   :  { %280 = dma.done.wait [#allocation5], 128  }
 0x10e   :  { %281 = vsyncadd [#allocation5], 4294967168 }
 0x10f   :  { %163 = vsyncpa [#allocation4], 1 }
 0x110   :  { %164 = vsyncpa [#allocation7], 1 }
 0x111   :  { %165 = vsyncpa [#allocation10], 1 }
 0x112   :  { %166 = vsyncpa [#allocation5], 1 }

</bundles_post_ra>
